<compile_context>
chip_gen: v6e
topology: v6e:2x2x1
jax: 0.10.0
libtpu: 0.0.40
codegen_flags: <defaults>
</compile_context>

<pallas_src>
import functools

import jax
import jax.numpy as jnp
from jax.experimental import pallas as pl
from jax.experimental.pallas import tpu as pltpu


def _band_diag_kernel(x_ref, w_ref, o_ref, slab_ref, *, bw, pad, L, TB):
    # x_ref:    (TB, C, L)   TB batch elements, full (C, L) resident
    # w_ref:    (C, bw*C)    fused weight: w[o, k*C + i] = conv_w[o, i, k] (+ diag at k=pad)
    # o_ref:    (TB, C, L)
    # slab_ref: (bw*C, TB*L) VMEM scratch: shifted windows stacked on sublanes,
    #                        batch lane-concatenated (L-aligned lane offsets).
    C = x_ref.shape[1]
    lane = jax.lax.broadcasted_iota(jnp.int32, (C, L), 1)   # lane index per column

    # slab[k*C + i, b*L + l] = x_pad[b, i, l + k], x_pad = zero-padded input (pad each side).
    for b in range(TB):                       # TB, bw static & tiny -> fully unrolled
        x = x_ref[b]                          # (C, L)
        for k in range(bw):
            s = k - pad                       # window shift: x[l + s]
            if s == 0:
                piece = x
            else:
                # rolled[l] = x[(l + s) mod L]; zero the wrapped lanes (one compare per tap).
                rolled = pltpu.roll(x, shift=(-s) % L, axis=1)
                valid = (lane < (L - s)) if s > 0 else (lane >= (-s))
                piece = jnp.where(valid, rolled, 0.0)
            slab_ref[k * C:(k + 1) * C, b * L:(b + 1) * L] = piece

    # Single fused MXU matmul: (C, bw*C) @ (bw*C, TB*L) -> (C, TB*L), f32 accumulation.
    res = jnp.dot(w_ref[...], slab_ref[...], preferred_element_type=jnp.float32)

    # Static, L-aligned lane slices back out to (TB, C, L).
    for b in range(TB):
        o_ref[b] = res[:, b * L:(b + 1) * L].astype(o_ref.dtype)


def _choose_tb(B, C, L, bw, itemsize):
    """Batch tile: aim for >=512 (target 2048) output lanes per step, bounded by VMEM."""
    target_lanes = 2048
    tb = min(B, max(1, -(-target_lanes // L)))

    def vmem_bytes(t):
        blk = t * C * L * itemsize            # one x / out block
        slab = bw * C * t * L * 4             # f32 scratch slab
        w = C * bw * C * itemsize
        return 2 * blk + 2 * blk + slab + 2 * w   # double-buffered in/out + slab + weight

    budget = 40 << 20                         # headroom below v7x's 64 MiB physical VMEM
    while tb > 1 and vmem_bytes(tb) > budget:
        tb -= 1
    while B % tb != 0:                        # keep grid/index_map exact
        tb -= 1
    return tb, vmem_bytes(tb)


def band_diag_layer_1d(x, conv_w, diag_w):
    """x: (B, C, L) float32; conv_w: (C, C, bw); diag_w: (C, C, 1)."""
    B, C, L = x.shape
    bw = conv_w.shape[-1]
    # Even bw would make banded / diag conv output lengths mismatch (PyTorch errors on add).
    assert bw % 2 == 1, "BandDiagLayer1d requires odd bw"
    pad = bw // 2

    # Fold the 1x1 "diag" conv into the center tap of the banded weight.
    w = conv_w.at[:, :, pad].add(diag_w[:, :, 0])
    # Re-layout so the tap index is a major dim, flatten to (C, bw*C):
    # w_flat[o, k*C + i] = w[o, i, k] (matches the in-kernel slab ordering).
    w_flat = jnp.transpose(w, (0, 2, 1)).reshape(C, bw * C)

    TB, per_step_bytes = _choose_tb(B, C, L, bw, jnp.dtype(x.dtype).itemsize)
    kernel = functools.partial(_band_diag_kernel, bw=bw, pad=pad, L=L, TB=TB)

    vmem_limit = int(min(max(2 * per_step_bytes, 16 << 20), 100 << 20))

    return pl.pallas_call(
        kernel,
        out_shape=jax.ShapeDtypeStruct((B, C, L), x.dtype),
        grid_spec=pltpu.PrefetchScalarGridSpec(
            num_scalar_prefetch=0,
            grid=(B // TB,),
            in_specs=[
                pl.BlockSpec((TB, C, L), lambda b: (b, 0, 0)),     # TB batch elements of x
                pl.BlockSpec((C, bw * C), lambda b: (0, 0)),       # fused weight (resident)
            ],
            out_specs=pl.BlockSpec((TB, C, L), lambda b: (b, 0, 0)),
            scratch_shapes=[pltpu.VMEM((bw * C, TB * L), jnp.float32)],
        ),
        compiler_params=pltpu.CompilerParams(
            dimension_semantics=("parallel",),
            vmem_limit_bytes=vmem_limit),
    )(x, w_flat)


def _reference(x, conv_w, diag_w):
    # Pure-JAX reference (PyTorch Conv1d == cross-correlation, NCL / OIK).
    pad = conv_w.shape[-1] // 2
    y_conv = jax.lax.conv_general_dilated(
        x, conv_w, window_strides=(1,), padding=[(pad, pad)],
        dimension_numbers=("NCH", "OIH", "NCH"))
    y_diag = jax.lax.conv_general_dilated(
        x, diag_w, window_strides=(1,), padding=[(0, 0)],
        dimension_numbers=("NCH", "OIH", "NCH"))
    return y_conv + y_diag


if __name__ == "__main__":
    B, C, L, bw = 2, 8, 128, 3      # width=8 channels, seq len 128, band width 3

    key = jax.random.PRNGKey(0)
    kx, kc, kd = jax.random.split(key, 3)
    x = jax.random.normal(kx, (B, C, L), dtype=jnp.float32)
    # Deterministic synthetic weights (shapes match nn.Conv1d: (out, in, k))
    scale_c = 1.0 / (C * bw) ** 0.5
    scale_d = 1.0 / C ** 0.5
    conv_w = jax.random.uniform(kc, (C, C, bw), jnp.float32, -scale_c, scale_c)
    diag_w = jax.random.uniform(kd, (C, C, 1), jnp.float32, -scale_d, scale_d)

    y = band_diag_layer_1d(x, conv_w, diag_w)
    y = jax.block_until_ready(y)

    y_ref = _reference(x, conv_w, diag_w)
    assert y.shape == y_ref.shape
    assert jnp.allclose(y, y_ref, atol=1e-4, rtol=1e-4)

    print("KERNEL_OK")
</pallas_src>

<mosaic_0001>
module attributes {stable_mosaic.version = 11 : i64} {
  func.func @_band_diag_kernel(%arg0: i32, %arg1: memref<2x8x128xf32, #tpu.memory_space<vmem>>, %arg2: memref<8x24xf32, #tpu.memory_space<vmem>>, %arg3: memref<2x8x128xf32, #tpu.memory_space<vmem>>, %arg4: memref<24x256xf32, #tpu.memory_space<vmem>>) attributes {dimension_semantics = [#tpu.dimension_semantics<parallel>], iteration_bounds = array<i64: 1>, scalar_prefetch = 0 : i64, scratch_operands = 1 : i64, tpu.core_type = #tpu.core_type<tc>, window_params = [{transform_indices = @transform_0, window_bounds = array<i64: 2, 8, 128>}, {pipeline_mode = #tpu.pipeline_mode<synchronous>, transform_indices = @transform_1, window_bounds = array<i64: 8, 24>}, {transform_indices = @transform_2, window_bounds = array<i64: 2, 8, 128>}]} {
    %0 = tpu.iota {dimensions = array<i32: 1>} : vector<8x128xi32>
    %c0 = arith.constant 0 : index
    %c0_0 = arith.constant 0 : index
    %c0_1 = arith.constant 0 : index
    %1 = vector.load %arg1[%c0, %c0_0, %c0_1] : memref<2x8x128xf32, #tpu.memory_space<vmem>>, vector<1x8x128xf32>
    %2 = vector.shape_cast %1 : vector<1x8x128xf32> to vector<8x128xf32>
    %c1_i32 = arith.constant 1 : i32
    %3 = tpu.dynamic_rotate %2 by %c1_i32 dim 1 : vector<8x128xf32>, i32 -> vector<8x128xf32>
    %c1_i32_2 = arith.constant 1 : i32
    %4 = vector.broadcast %c1_i32_2 : i32 to vector<8x128xi32>
    %5 = arith.cmpi sge, %0, %4 : vector<8x128xi32>
    %cst = arith.constant 0.000000e+00 : f32
    %6 = vector.broadcast %cst : f32 to vector<8x128xf32>
    %7 = arith.select %5, %3, %6 : vector<8x128xi1>, vector<8x128xf32>
    %c0_3 = arith.constant 0 : index
    %c0_4 = arith.constant 0 : index
    %8 = vector.load %arg4[%c0_3, %c0_4] : memref<24x256xf32, #tpu.memory_space<vmem>>, vector<8x128xf32>
    tpu.vector_store %arg4[%c0_3, %c0_4], %7 {strides = array<i32>} : memref<24x256xf32, #tpu.memory_space<vmem>>, vector<8x128xf32>,
    %c8 = arith.constant 8 : index
    %c0_5 = arith.constant 0 : index
    %9 = vector.load %arg4[%c8, %c0_5] : memref<24x256xf32, #tpu.memory_space<vmem>>, vector<8x128xf32>
    tpu.vector_store %arg4[%c8, %c0_5], %2 {strides = array<i32>} : memref<24x256xf32, #tpu.memory_space<vmem>>, vector<8x128xf32>,
    %c127_i32 = arith.constant 127 : i32
    %10 = tpu.dynamic_rotate %2 by %c127_i32 dim 1 : vector<8x128xf32>, i32 -> vector<8x128xf32>
    %c127_i32_6 = arith.constant 127 : i32
    %11 = vector.broadcast %c127_i32_6 : i32 to vector<8x128xi32>
    %12 = arith.cmpi slt, %0, %11 : vector<8x128xi32>
    %cst_7 = arith.constant 0.000000e+00 : f32
    %13 = vector.broadcast %cst_7 : f32 to vector<8x128xf32>
    %14 = arith.select %12, %10, %13 : vector<8x128xi1>, vector<8x128xf32>
    %c16 = arith.constant 16 : index
    %c0_8 = arith.constant 0 : index
    %15 = vector.load %arg4[%c16, %c0_8] : memref<24x256xf32, #tpu.memory_space<vmem>>, vector<8x128xf32>
    tpu.vector_store %arg4[%c16, %c0_8], %14 {strides = array<i32>} : memref<24x256xf32, #tpu.memory_space<vmem>>, vector<8x128xf32>,
    %c1 = arith.constant 1 : index
    %c0_9 = arith.constant 0 : index
    %c0_10 = arith.constant 0 : index
    %16 = vector.load %arg1[%c1, %c0_9, %c0_10] : memref<2x8x128xf32, #tpu.memory_space<vmem>>, vector<1x8x128xf32>
    %17 = vector.shape_cast %16 : vector<1x8x128xf32> to vector<8x128xf32>
    %c1_i32_11 = arith.constant 1 : i32
    %18 = tpu.dynamic_rotate %17 by %c1_i32_11 dim 1 : vector<8x128xf32>, i32 -> vector<8x128xf32>
    %c1_i32_12 = arith.constant 1 : i32
    %19 = vector.broadcast %c1_i32_12 : i32 to vector<8x128xi32>
    %20 = arith.cmpi sge, %0, %19 : vector<8x128xi32>
    %cst_13 = arith.constant 0.000000e+00 : f32
    %21 = vector.broadcast %cst_13 : f32 to vector<8x128xf32>
    %22 = arith.select %20, %18, %21 : vector<8x128xi1>, vector<8x128xf32>
    %c0_14 = arith.constant 0 : index
    %c128 = arith.constant 128 : index
    %23 = vector.load %arg4[%c0_14, %c128] : memref<24x256xf32, #tpu.memory_space<vmem>>, vector<8x128xf32>
    tpu.vector_store %arg4[%c0_14, %c128], %22 {strides = array<i32>} : memref<24x256xf32, #tpu.memory_space<vmem>>, vector<8x128xf32>,
    %c8_15 = arith.constant 8 : index
    %c128_16 = arith.constant 128 : index
    %24 = vector.load %arg4[%c8_15, %c128_16] : memref<24x256xf32, #tpu.memory_space<vmem>>, vector<8x128xf32>
    tpu.vector_store %arg4[%c8_15, %c128_16], %17 {strides = array<i32>} : memref<24x256xf32, #tpu.memory_space<vmem>>, vector<8x128xf32>,
    %c127_i32_17 = arith.constant 127 : i32
    %25 = tpu.dynamic_rotate %17 by %c127_i32_17 dim 1 : vector<8x128xf32>, i32 -> vector<8x128xf32>
    %c127_i32_18 = arith.constant 127 : i32
    %26 = vector.broadcast %c127_i32_18 : i32 to vector<8x128xi32>
    %27 = arith.cmpi slt, %0, %26 : vector<8x128xi32>
    %cst_19 = arith.constant 0.000000e+00 : f32
    %28 = vector.broadcast %cst_19 : f32 to vector<8x128xf32>
    %29 = arith.select %27, %25, %28 : vector<8x128xi1>, vector<8x128xf32>
    %c16_20 = arith.constant 16 : index
    %c128_21 = arith.constant 128 : index
    %30 = vector.load %arg4[%c16_20, %c128_21] : memref<24x256xf32, #tpu.memory_space<vmem>>, vector<8x128xf32>
    tpu.vector_store %arg4[%c16_20, %c128_21], %29 {strides = array<i32>} : memref<24x256xf32, #tpu.memory_space<vmem>>, vector<8x128xf32>,
    %c0_22 = arith.constant 0 : index
    %c0_23 = arith.constant 0 : index
    %31 = vector.load %arg2[%c0_22, %c0_23] : memref<8x24xf32, #tpu.memory_space<vmem>>, vector<8x24xf32>
    %c0_24 = arith.constant 0 : index
    %c0_25 = arith.constant 0 : index
    %32 = vector.load %arg4[%c0_24, %c0_25] : memref<24x256xf32, #tpu.memory_space<vmem>>, vector<24x256xf32>
    %cst_26 = arith.constant dense<0.000000e+00> : vector<8x256xf32>
    %33 = tpu.matmul %31, %32, %cst_26 {dimension_numbers = #tpu.dot_dimension_numbers<[1], [0], [0], [1], [0, 0, 1, 1], [], []>} : vector<8x24xf32>, vector<24x256xf32>, vector<8x256xf32> -> vector<8x256xf32>
    %34 = vector.extract_strided_slice %33 {offsets = [0, 0], sizes = [8, 128], strides = [1, 1]} : vector<8x256xf32> to vector<8x128xf32>
    %c0_27 = arith.constant 0 : index
    %c0_28 = arith.constant 0 : index
    %c0_29 = arith.constant 0 : index
    %35 = vector.load %arg3[%c0_27, %c0_28, %c0_29] : memref<2x8x128xf32, #tpu.memory_space<vmem>>, vector<1x8x128xf32>
    %36 = vector.shape_cast %35 : vector<1x8x128xf32> to vector<8x128xf32>
    %37 = vector.shape_cast %34 : vector<8x128xf32> to vector<1x8x128xf32>
    tpu.vector_store %arg3[%c0_27, %c0_28, %c0_29], %37 {strides = array<i32>} : memref<2x8x128xf32, #tpu.memory_space<vmem>>, vector<1x8x128xf32>,
    %38 = vector.extract_strided_slice %33 {offsets = [0, 128], sizes = [8, 128], strides = [1, 1]} : vector<8x256xf32> to vector<8x128xf32>
    %c1_30 = arith.constant 1 : index
    %c0_31 = arith.constant 0 : index
    %c0_32 = arith.constant 0 : index
    %39 = vector.load %arg3[%c1_30, %c0_31, %c0_32] : memref<2x8x128xf32, #tpu.memory_space<vmem>>, vector<1x8x128xf32>
    %40 = vector.shape_cast %39 : vector<1x8x128xf32> to vector<8x128xf32>
    %41 = vector.shape_cast %38 : vector<8x128xf32> to vector<1x8x128xf32>
    tpu.vector_store %arg3[%c1_30, %c0_31, %c0_32], %41 {strides = array<i32>} : memref<2x8x128xf32, #tpu.memory_space<vmem>>, vector<1x8x128xf32>,
    return
  }
  func.func @transform_0(%arg0: i32) -> (i32, i32, i32) {
    %c0_i32 = arith.constant 0 : i32
    %c0_i32_0 = arith.constant 0 : i32
    %c0_i32_1 = arith.constant 0 : i32
    return %arg0, %c0_i32, %c0_i32_0 : i32, i32, i32
  }
  func.func @transform_1(%arg0: i32) -> (i32, i32) {
    %c0_i32 = arith.constant 0 : i32
    %c0_i32_0 = arith.constant 0 : i32
    %c0_i32_1 = arith.constant 0 : i32
    return %c0_i32, %c0_i32_0 : i32, i32
  }
  func.func @transform_2(%arg0: i32) -> (i32, i32, i32) {
    %c0_i32 = arith.constant 0 : i32
    %c0_i32_0 = arith.constant 0 : i32
    %c0_i32_1 = arith.constant 0 : i32
    return %arg0, %c0_i32, %c0_i32_0 : i32, i32, i32
  }
}

</mosaic_0001>

<bundles_post_ra>
// kernel: tpu_custom_call.1
= control target key start
LH: loop header
LB: loop body
LE: loop exit
PB: predicated region body
PF: predicated region fallthrough
CT: control target
= control target key end

     0   :  { %7 = vsyncpa [#allocation4], 0  ;;  %s283_s0 = inlined_call_operand.hbm [shape: f32[2,8,128], index: 0, kind: input, shape index: {}]   ;;  %s284_s1 = inlined_call_operand.hbm [shape: f32[8,24], index: 1, kind: input, shape index: {}]   ;;  %s285_s2 = inlined_call_operand.hbm [shape: f32[2,8,128], index: 2, kind: output, shape index: {}]  }
   0x1   :  { %8 = vsyncpa [#allocation7], 0 }
   0x2   :  { %9 = vsyncpa [#allocation5], 0  ;;  %s245_s9 = smov [#allocation3]  }
   0x3   :  { %s15_s10 = sshll.u32 %s245_s9, 4  ;;  %s16_s10 = int_to_ptr.vmem [resolvable:$true] %s15_s10 }
   0x4   :  { %s187_s11 = scalar_lea.vmem %s16_s10, 256  ;;  %p192_p1 = scmp.lt.s32.totalorder %s16_s10, %s16_s10 }
   0x5   :  { %p188_p0 = scmp.ne.s32.totalorder %s16_s10, %s187_s11  ;;  %p193_p2 = scmp.lt.s32.totalorder %s187_s11, %s187_s11 }
   0x7   :  { %p194_p3 = por %p193_p2, %p192_p1 }
   0x9   :  { %p195_p4 = pnand %p194_p3, %p188_p0 }
   0xb   :  { %198 = shalt.err (!%p195_p4)
}
   0xc   :  { %s246_s12 = smov 128   ;;  %s247_s13 = smov 8  }
   0xd   :  { %21 = dma.hbm_to_vmem [thread:$0]  %s283_s0, 256, %s16_s10, [#allocation4], %s246_s12, %s246_s12, %s247_s13  }
   0xe   :  { %s248_s16 = smov [#allocation6]  }
   0xf   :  { %s28_s17 = sshll.u32 %s248_s16, 4  ;;  %s29_s17 = int_to_ptr.vmem [resolvable:$true] %s28_s17 }
  0x10   :  { %s207_s18 = scalar_lea.vmem %s29_s17, 128  ;;  %p212_p6 = scmp.lt.s32.totalorder %s29_s17, %s29_s17 }
  0x11   :  { %p208_p5 = scmp.ne.s32.totalorder %s29_s17, %s207_s18  ;;  %p213_p7 = scmp.lt.s32.totalorder %s207_s18, %s207_s18 }
  0x13   :  { %p214_p8 = por %p213_p7, %p212_p6 }
  0x15   :  { %p215_p9 = pnand %p214_p8, %p208_p5 }
  0x17   :  { %218 = shalt.err (!%p215_p9)
}
  0x18   :  { %31 = dma.hbm_to_vmem [thread:$0]  %s284_s1, 128, %s29_s17, [#allocation7]  }
  0x19   :  { %239 = dma.done.wait [#allocation4], 256  }
  0x1a   :  { %240 = vsyncadd [#allocation4], 4294967040 }
  0x1b   :  { %241 = dma.done.wait [#allocation7], 128  }
  0x1c   :  { %242 = vsyncadd [#allocation7], 4294967168  ;;  %v249_v0 = vmov 0.0   ;;  %v53_v1 = vld [vmem:[#allocation3 + $0x8] sm:$0xff]  ;;  %s250_s0 = smov 127   ;;  %s251_s21 = smov 1   ;;  %v38_v3 = vlaneseq }
  0x1d   :  { %138 = vmatprep.mubr.f32.mxu0 %v249_v0  ;;  %59 = vrot.lane.b32.xlu0 %v53_v1, %s250_s0  ;;  %v40_v2 = vld [vmem:[#allocation3] sm:$0xff]  ;;  %v63_v9 = vld [vmem:[#allocation6] sm:$0xff]  ;;  %vm70_vm2 = vcmask 195584   ;;  %s252_s1 = smov [#allocation8]  }
  0x1e   :  { %54 = vrot.lane.b32.xlu1 %v53_v1, %s251_s21  ;;  %v39_v4 = vand.u32 127, %v38_v3  ;;  %s153_s22 = sshll.u32 %s252_s1, 4  ;;  %s154_s22 = int_to_ptr.vmem [resolvable:$true] %s153_s22 }
  0x1f   :  { %s219_s23 = scalar_lea.vmem %s154_s22, 256  ;;  %p224_p11 = scmp.lt.s32.totalorder %s154_s22, %s154_s22 }
  0x20   :  { %vm49_vm0 = vcmp.lt.s32.totalorder %v39_v4, 127  ;;  %vm43_vm1 = vcmp.ge.s32.totalorder %v39_v4, 1  ;;  %p220_p10 = scmp.ne.s32.totalorder %s154_s22, %s219_s23  ;;  %p225_p12 = scmp.lt.s32.totalorder %s219_s23, %s219_s23 }
  0x21   :  { %47 = vrot.lane.b32.xlu0 %v40_v2, %s250_s0 }
  0x22   :  { %41 = vrot.lane.b32.xlu1 %v40_v2, %s251_s21  ;;  %p226_p13 = por %p225_p12, %p224_p11 }
  0x24   :  { %p227_p0 = pnand %p226_p13, %p220_p10 }
  0x8f   :  { %v60_v5 = vpop.permute.xlu0 %59 }
  0x90   :  { %v55_v6 = vpop.permute.xlu1 %54  ;;  %167 = vmatprep.subr.msk.mxu0 %vm49_vm0, %v60_v5 }
  0x93   :  { %v48_v7 = vpop.permute.xlu0 %47 }
  0x94   :  { %168 = vmatpush1.msk.msra.mxu0 %vm49_vm0, %v48_v7  ;;  %v42_v8 = vpop.permute.xlu1 %41 }
  0x95   :  { %102 = vmatprep.subr.mxu0 %v53_v1 }
  0x96   :  { %103 = vmatpush1.msra.mxu0 %v40_v2 }
  0x97   :  { %169 = vmatprep.subr.msk.mxu0 %vm43_vm1, %v55_v6 }
  0x98   :  { %170 = vmatpush1.msk.msra.mxu0 %vm43_vm1, %v42_v8 }
  0x99   :  { %166 = vmatmul.mubr.msk.f32.vlgmr.msra.gmra.mxu0 %vm70_vm2, %v63_v9 }
 0x159   :  { %v140_v10 = vpop.f32.mrf.mxu0 }
 0x15a   :  { %145 = vst [vmem:[#allocation8] sm:$0xff] %v140_v10 }
 0x15b   :  { %v142_v11 = vpop.f32.mrf.mxu0 }
 0x15c   :  { %147 = vst [vmem:[#allocation8 + $0x8] sm:$0xff] %v142_v11 }
 0x15d   :  { %230 = shalt.err (!%p227_p0)
}
 0x15e   :  { %159 = dma.vmem_to_hbm [thread:$0]  %s154_s22, 256, %s285_s2, [#allocation5], %s246_s12, %s246_s12, %s247_s13  }
 0x15f   :  { %243 = dma.done.wait [#allocation5], 256  }
 0x160   :  { %244 = vsyncadd [#allocation5], 4294967040 }
 0x161   :  { %163 = vsyncpa [#allocation4], 1 }
 0x162   :  { %164 = vsyncpa [#allocation7], 1 }
 0x163   :  { %165 = vsyncpa [#allocation5], 1 }

</bundles_post_ra>
